<compile_context>
chip_gen: v6e
topology: v6e:2x2x1
jax: 0.10.0
libtpu: 0.0.40
codegen_flags: <defaults>
</compile_context>

<pallas_src>
import numpy as np
import jax
import jax.numpy as jnp
from jax.experimental import pallas as pl
from jax.experimental.pallas import tpu as pltpu


# ----------------------------------------------------------------------------
# Parameter (buffer) construction, mirrors GridEncoder.__init__ exactly.
# ----------------------------------------------------------------------------
def _make_grid_encoder_params(grid_size=5,
                              min_val=(-0.65, -0.9),
                              max_val=(0.9, 0.35),
                              sigma_scale=0.8):
    min_val = np.asarray(min_val, dtype=np.float32)
    max_val = np.asarray(max_val, dtype=np.float32)
    x_centers = np.linspace(min_val[0], max_val[0], grid_size, dtype=np.float32)
    y_centers = np.linspace(min_val[1], max_val[1], grid_size, dtype=np.float32)
    # torch.meshgrid(..., indexing='ij') then flatten -> x varies slowest.
    Xg, Yg = np.meshgrid(x_centers, y_centers, indexing="ij")
    grid_centers = np.stack([Xg.flatten(), Yg.flatten()], axis=1)  # [G*G, 2]
    grid_spacing_x = (max_val[0] - min_val[0]) / (grid_size - 1)
    grid_spacing_y = (max_val[1] - min_val[1]) / (grid_size - 1)
    sigma_x = np.float32(sigma_scale * grid_spacing_x)
    sigma_y = np.float32(sigma_scale * grid_spacing_y)
    return grid_centers.astype(np.float32), sigma_x, sigma_y


def _cdiv(a, b):
    return -(-a // b)


def _round_up(v, m):
    return ((v + m - 1) // m) * m


def _choose_tiles(batch, block_b):
    """Balanced batch tiles.

    >= 2 tiles when possible (pipeline overlap + v7x dual-TC sharding), tile
    width a multiple of 512 lanes (multiple of 128 for the lane-major input
    block and of 8 for the batch-major output block), padding waste ~0.
    """
    nb = max(2, _cdiv(batch, block_b))
    if nb % 2:
        nb += 1                      # even split helps v7x dual-TC sharding
    tb = _round_up(_cdiv(batch, nb), 512)
    nb = _cdiv(batch, tb)            # rounding tb up may reduce the tile count
    return tb, nb


# ----------------------------------------------------------------------------
# Kernel
# ----------------------------------------------------------------------------
_LANE_CHUNK = 512   # per-chunk transpose size; TB is always a multiple of 512


def _grid_encoder_kernel(xt_ref, cx_ref, cy_ref, o_ref):
    # xt_ref: [2, TB]    pre-scaled coords, batch on lanes (row 0 = x', row 1 = y')
    # cx_ref: [G2P, 1]   pre-scaled x centers (resident block, fetched once)
    # cy_ref: [G2P, 1]   pre-scaled y centers
    # o_ref:  [TB, G2]   batch-major output block (written to HBM exactly once)
    tb, g2 = o_ref.shape
    cx = cx_ref[...]                                 # [G2P, 1]
    cy = cy_ref[...]                                 # [G2P, 1]
    for c in range(tb // _LANE_CHUNK):               # static unroll
        lo = c * _LANE_CHUNK
        hi = lo + _LANE_CHUNK
        xs = xt_ref[0:1, lo:hi]                      # [1, CH]
        ys = xt_ref[1:2, lo:hi]                      # [1, CH]
        dx = xs - cx                                 # [G2P, CH] lane-dense
        dy = ys - cy                                 # [G2P, CH]
        act = jnp.exp(-(dx * dx + dy * dy))          # [G2P, CH]
        # In-kernel relayout to batch-major (XLU transpose, different slot than
        # the VPU/EUP work) -> avoids a separate XLA transpose pass over the
        # whole output in HBM.
        o_ref[lo:hi, :] = act.T[:, :g2].astype(o_ref.dtype)


# ----------------------------------------------------------------------------
# Reference (pure JAX, replicates the PyTorch forward exactly)
# ----------------------------------------------------------------------------
def _reference_forward(x, grid_centers, sigma_x, sigma_y):
    diff = x[:, None, :] - grid_centers[None, :, :]   # [B, G2, 2]
    dx = diff[:, :, 0]
    dy = diff[:, :, 1]
    return jnp.exp(-dx ** 2 / (2 * sigma_x ** 2) - dy ** 2 / (2 * sigma_y ** 2))


# ----------------------------------------------------------------------------
# Public wrapper
# ----------------------------------------------------------------------------
def grid_encoder_forward(x, grid_centers, sigma_x, sigma_y, *,
                         block_b=8192, min_pallas_batch=1024,
                         out_dtype=jnp.float32):
    """x: [B, 2] float32 -> activations: [B, grid_size**2] (out_dtype).

    out_dtype=jnp.bfloat16 halves the dominant output-store cost (biggest
    lever on v5e/v6e) when the consumer accepts bf16; compute stays f32.
    """
    B = int(x.shape[0])
    G2 = int(grid_centers.shape[0])
    x = x.astype(jnp.float32)
    centers = jnp.asarray(grid_centers, dtype=jnp.float32)          # [G2, 2]

    if B < min_pallas_batch:
        # Tiny batch: a fused XLA elementwise graph beats any kernel launch.
        return _reference_forward(x, centers, jnp.float32(sigma_x),
                                  jnp.float32(sigma_y)).astype(out_dtype)

    # Pre-scale by 1/(sqrt(2)*sigma) per axis so the kernel body is just
    # exp(-(dx*dx + dy*dy)).
    inv_sx = float(1.0 / (np.sqrt(2.0) * float(sigma_x)))
    inv_sy = float(1.0 / (np.sqrt(2.0) * float(sigma_y)))
    scale = jnp.array([[inv_sx], [inv_sy]], dtype=jnp.float32)       # [2, 1]

    TB, nb = _choose_tiles(B, block_b)
    assert TB % _LANE_CHUNK == 0
    B_lanes = nb * TB

    # Transposed, pre-scaled, lane-padded coordinates: [2, B_lanes] (tiny).
    xt = jnp.zeros((2, B_lanes), jnp.float32).at[:, :B].set(x.T * scale)

    # Pre-scaled centers, padded to a sublane multiple; pad rows are sliced
    # off before the store inside the kernel.
    G2P = _round_up(G2, 8)
    cx = jnp.zeros((G2P, 1), jnp.float32).at[:G2, 0].set(centers[:, 0] * inv_sx)
    cy = jnp.zeros((G2P, 1), jnp.float32).at[:G2, 0].set(centers[:, 1] * inv_sy)

    # Exact output rows when possible: the final partial block's write is
    # clipped by Pallas, so no trailing slice/copy pass over the output.
    out_rows = B if B >= TB else TB

    out_itemsize = jnp.dtype(out_dtype).itemsize
    cost = pl.CostEstimate(
        flops=6 * B_lanes * G2P,
        transcendentals=B_lanes * G2P,
        bytes_accessed=4 * (2 * B_lanes + 2 * G2P) + out_rows * G2 * out_itemsize,
    )

    out = pl.pallas_call(
        _grid_encoder_kernel,
        out_shape=jax.ShapeDtypeStruct((out_rows, G2), out_dtype),
        grid=(nb,),
        in_specs=[
            pl.BlockSpec((2, TB), lambda i: (0, i)),     # coords (batch on lanes)
            pl.BlockSpec((G2P, 1), lambda i: (0, 0)),    # resident x centers
            pl.BlockSpec((G2P, 1), lambda i: (0, 0)),    # resident y centers
        ],
        out_specs=pl.BlockSpec((TB, G2), lambda i: (i, 0)),
        compiler_params=pltpu.CompilerParams(
            dimension_semantics=("parallel",),           # v7x: shard across TCs
            vmem_limit_bytes=32 * 1024 * 1024),          # explicit, portable
        cost_estimate=cost,
    )(xt, cx, cy)

    return out if out_rows == B else out[:B]


# ----------------------------------------------------------------------------
# Self-test
# ----------------------------------------------------------------------------
if __name__ == "__main__":
    grid_size = 5
    centers_np, sigma_x, sigma_y = _make_grid_encoder_params(grid_size=grid_size)
    grid_centers = jnp.asarray(centers_np)

    key = jax.random.PRNGKey(0)
    k1, k2 = jax.random.split(key)

    # Small batch (min_pallas_batch=0 forces the Pallas path; in production a
    # batch this small would take the fused XLA path).
    x_small = jax.random.uniform(k1, (8, 2), dtype=jnp.float32,
                                 minval=-0.9, maxval=0.9)
    out_small = jax.block_until_ready(
        grid_encoder_forward(x_small, grid_centers, sigma_x, sigma_y,
                             min_pallas_batch=0))
    ref_small = _reference_forward(x_small, grid_centers,
                                   jnp.float32(sigma_x), jnp.float32(sigma_y))
    assert out_small.shape == (8, grid_size * grid_size)
    np.testing.assert_allclose(np.asarray(out_small), np.asarray(ref_small),
                               rtol=2e-5, atol=2e-6)

    # Multi-tile batch exercising balanced tiling + clipped final output block.
    x_big = jax.random.uniform(k2, (777, 2), dtype=jnp.float32,
                               minval=-1.0, maxval=1.0)
    out_big = jax.block_until_ready(
        grid_encoder_forward(x_big, grid_centers, sigma_x, sigma_y,
                             block_b=512, min_pallas_batch=0))
    ref_big = _reference_forward(x_big, grid_centers,
                                 jnp.float32(sigma_x), jnp.float32(sigma_y))
    assert out_big.shape == (777, grid_size * grid_size)
    np.testing.assert_allclose(np.asarray(out_big), np.asarray(ref_big),
                               rtol=2e-5, atol=2e-6)

    print("KERNEL_OK")
</pallas_src>

<mosaic_0001>
module attributes {stable_mosaic.version = 11 : i64} {
  func.func @_grid_encoder_kernel(%arg0: i32, %arg1: memref<2x512xf32, #tpu.memory_space<vmem>>, %arg2: memref<32x1xf32, #tpu.memory_space<vmem>>, %arg3: memref<32x1xf32, #tpu.memory_space<vmem>>, %arg4: memref<512x25xf32, #tpu.memory_space<vmem>>) attributes {dimension_semantics = [#tpu.dimension_semantics<parallel>], iteration_bounds = array<i64: 1>, scalar_prefetch = 0 : i64, scratch_operands = 0 : i64, tpu.core_type = #tpu.core_type<tc>, window_params = [{transform_indices = @transform_0, window_bounds = array<i64: 2, 512>}, {pipeline_mode = #tpu.pipeline_mode<synchronous>, transform_indices = @transform_1, window_bounds = array<i64: 32, 1>}, {pipeline_mode = #tpu.pipeline_mode<synchronous>, transform_indices = @transform_2, window_bounds = array<i64: 32, 1>}, {transform_indices = @transform_3, window_bounds = array<i64: 512, 25>}]} {
    %c0 = arith.constant 0 : index
    %c0_0 = arith.constant 0 : index
    %0 = vector.load %arg2[%c0, %c0_0] : memref<32x1xf32, #tpu.memory_space<vmem>>, vector<32x1xf32>
    %c0_1 = arith.constant 0 : index
    %c0_2 = arith.constant 0 : index
    %1 = vector.load %arg3[%c0_1, %c0_2] : memref<32x1xf32, #tpu.memory_space<vmem>>, vector<32x1xf32>
    %c0_3 = arith.constant 0 : index
    %c0_4 = arith.constant 0 : index
    %2 = vector.load %arg1[%c0_3, %c0_4] : memref<2x512xf32, #tpu.memory_space<vmem>>, vector<1x512xf32>
    %c1 = arith.constant 1 : index
    %c0_5 = arith.constant 0 : index
    %3 = vector.load %arg1[%c1, %c0_5] : memref<2x512xf32, #tpu.memory_space<vmem>>, vector<1x512xf32>
    %4 = vector.broadcast %2 : vector<1x512xf32> to vector<32x512xf32>
    %5 = vector.broadcast %0 : vector<32x1xf32> to vector<32x512xf32>
    %6 = arith.subf %4, %5 : vector<32x512xf32>
    %7 = vector.broadcast %3 : vector<1x512xf32> to vector<32x512xf32>
    %8 = vector.broadcast %1 : vector<32x1xf32> to vector<32x512xf32>
    %9 = arith.subf %7, %8 : vector<32x512xf32>
    %10 = arith.mulf %6, %6 : vector<32x512xf32>
    %11 = arith.mulf %9, %9 : vector<32x512xf32>
    %12 = arith.addf %10, %11 : vector<32x512xf32>
    %cst = arith.constant 0.000000e+00 : f32
    %13 = vector.broadcast %cst : f32 to vector<32x512xf32>
    %14 = arith.subf %13, %12 : vector<32x512xf32>
    %15 = math.exp %14 : vector<32x512xf32>
    %16 = tpu.transpose %15, [1, 0] : vector<32x512xf32> -> vector<512x32xf32>
    %17 = vector.extract_strided_slice %16 {offsets = [0, 0], sizes = [512, 25], strides = [1, 1]} : vector<512x32xf32> to vector<512x25xf32>
    %c0_6 = arith.constant 0 : index
    %c0_7 = arith.constant 0 : index
    %18 = vector.load %arg4[%c0_6, %c0_7] : memref<512x25xf32, #tpu.memory_space<vmem>>, vector<512x25xf32>
    tpu.vector_store %arg4[%c0_6, %c0_7], %17 {strides = array<i32>} : memref<512x25xf32, #tpu.memory_space<vmem>>, vector<512x25xf32>,
    return
  }
  func.func @transform_0(%arg0: i32) -> (i32, i32) {
    %c0_i32 = arith.constant 0 : i32
    %c0_i32_0 = arith.constant 0 : i32
    return %c0_i32, %arg0 : i32, i32
  }
  func.func @transform_1(%arg0: i32) -> (i32, i32) {
    %c0_i32 = arith.constant 0 : i32
    %c0_i32_0 = arith.constant 0 : i32
    %c0_i32_1 = arith.constant 0 : i32
    return %c0_i32, %c0_i32_0 : i32, i32
  }
  func.func @transform_2(%arg0: i32) -> (i32, i32) {
    %c0_i32 = arith.constant 0 : i32
    %c0_i32_0 = arith.constant 0 : i32
    %c0_i32_1 = arith.constant 0 : i32
    return %c0_i32, %c0_i32_0 : i32, i32
  }
  func.func @transform_3(%arg0: i32) -> (i32, i32) {
    %c0_i32 = arith.constant 0 : i32
    %c0_i32_0 = arith.constant 0 : i32
    return %arg0, %c0_i32 : i32, i32
  }
}

</mosaic_0001>

<bundles_post_ra>
// kernel: tpu_custom_call.1
= control target key start
LH: loop header
LB: loop body
LE: loop exit
PB: predicated region body
PF: predicated region fallthrough
CT: control target
= control target key end

     0   :  { %v26_v0 = vlaneseq  ;;  %v469_v1 = vmov 0   ;;  %vm363_vm0 = vcmask 203776   ;;  %s842_s1 = inlined_call_operand.vmem [shape: f32[32,1], index: 1, kind: input, shape index: {}]   ;;  %s843_s2 = inlined_call_operand.vmem [shape: f32[32,1], index: 2, kind: input, shape index: {}]   ;;  %s844_s0 = inlined_call_operand.vmem [shape: f32[2,512], index: 0, kind: input, shape index: {}]   ;;  %s845_s3 = inlined_call_operand.vmem [shape: f32[512,25], index: 3, kind: output, shape index: {}]  }
   0x1   :  { %436 = vset.pattern.permute.xlu1 %v469_v1  ;;  %435 = vset.pattern.permute.xlu0 %v469_v1  ;;  %v15_v2 = vld [vmem:[%s842_s1 + $0x8] sm:$0xff]  ;;  %v14_v3 = vld [vmem:[%s842_s1] sm:$0xff]  ;;  %v20_v12 = vld [vmem:[%s843_s2 + $0x10] sm:$0xff] }
   0x2   :  { %53 = vperm.xlu1 %436, %v15_v2   ;;  %48 = vperm.xlu0 %435, %v14_v3   ;;  %v27_v4 = vshrl.u32 %v26_v0, 7  ;;  %v19_v5 = vld [vmem:[%s843_s2 + $0x8] sm:$0xff]  ;;  %v18_v6 = vld [vmem:[%s843_s2] sm:$0xff]  ;;  %v16_v13 = vld [vmem:[%s842_s1 + $0x10] sm:$0xff] }
   0x3   :  { %v22_v7 = vld [vmem:[%s844_s0] ss:$2 sm:$0xf]  ;;  %v432_v10 = vld [vmem:[%s844_s0 + $0x1] ss:$2 sm:$0xf] }
   0x4   :  { %v36_v8 = vsub.s32 2, %v27_v4  ;;  %v40_v9 = vsub.s32 3, %v27_v4  ;;  %v21_v17 = vld [vmem:[%s843_s2 + $0x18] sm:$0xff]  ;;  %v28_v19 = vsub.s32 0, %v27_v4  ;;  %v32_v20 = vsub.s32 1, %v27_v4 }
   0x5   :  { %v17_v18 = vld [vmem:[%s842_s1 + $0x18] sm:$0xff] }
   0x6   :  { %110 = vperm.xlu1 %436, %v19_v5   ;;  %105 = vperm.xlu0 %435, %v18_v6   ;;  %v508_v11 = vrot.slane %v22_v7, %v36_v8  ;;  %v516_v14 = vrot.slane %v22_v7, %v40_v9  ;;  %v518_v15 = vrot.slane %v432_v10, %v36_v8 }
   0x7   :  { %v520_v16 = vrot.slane %v432_v10, %v40_v9  ;;  %v528_v21 = vrot.slane %v22_v7, %v28_v19  ;;  %v530_v22 = vrot.slane %v22_v7, %v32_v20  ;;  %v532_v25 = vrot.slane %v432_v10, %v28_v19 }
   0x8   :  { %v534_v26 = vrot.slane %v432_v10, %v32_v20 }
   0xa   :  { %115 = vperm.xlu1 %436, %v20_v12   ;;  %58 = vperm.xlu0 %435, %v16_v13  }
   0xe   :  { %120 = vperm.xlu1 %436, %v21_v17   ;;  %63 = vperm.xlu0 %435, %v17_v18  }
  0x7d   :  { %v54_v23 = vpop.permute.xlu1 %53  ;;  %v49_v24 = vpop.permute.xlu0 %48 }
  0x7e   :  { %v70_v27 = vsub.f32 %v528_v21, %v54_v23  ;;  %v71_v28 = vsub.f32 %v530_v22, %v54_v23  ;;  %v72_v29 = vsub.f32 %v508_v11, %v54_v23  ;;  %v73_v30 = vsub.f32 %v516_v14, %v54_v23 }
  0x7f   :  { %v66_v31 = vsub.f32 %v528_v21, %v49_v24  ;;  %v67_v32 = vsub.f32 %v530_v22, %v49_v24  ;;  %v68_v33 = vsub.f32 %v508_v11, %v49_v24  ;;  %v69_v34 = vsub.f32 %v516_v14, %v49_v24 }
  0x80   :  { %v143_v35 = vmul.f32 %v70_v27, %v70_v27  ;;  %v144_v36 = vmul.f32 %v71_v28, %v71_v28  ;;  %v145_v37 = vmul.f32 %v72_v29, %v72_v29  ;;  %v146_v38 = vmul.f32 %v73_v30, %v73_v30 }
  0x81   :  { %v139_v39 = vmul.f32 %v66_v31, %v66_v31  ;;  %v140_v40 = vmul.f32 %v67_v32, %v67_v32  ;;  %v141_v41 = vmul.f32 %v68_v33, %v68_v33  ;;  %v142_v42 = vmul.f32 %v69_v34, %v69_v34  ;;  %v111_v43 = vpop.permute.xlu1 %110  ;;  %v106_v44 = vpop.permute.xlu0 %105 }
  0x82   :  { %v127_v45 = vsub.f32 %v532_v25, %v111_v43  ;;  %v128_v46 = vsub.f32 %v534_v26, %v111_v43  ;;  %v129_v47 = vsub.f32 %v518_v15, %v111_v43  ;;  %v130_v48 = vsub.f32 %v520_v16, %v111_v43 }
  0x83   :  { %v123_v49 = vsub.f32 %v532_v25, %v106_v44  ;;  %v124_v50 = vsub.f32 %v534_v26, %v106_v44  ;;  %v125_v51 = vsub.f32 %v518_v15, %v106_v44  ;;  %v126_v52 = vsub.f32 %v520_v16, %v106_v44 }
  0x84   :  { %v159_v53 = vmul.f32 %v127_v45, %v127_v45  ;;  %v160_v54 = vmul.f32 %v128_v46, %v128_v46  ;;  %v161_v55 = vmul.f32 %v129_v47, %v129_v47  ;;  %v162_v56 = vmul.f32 %v130_v48, %v130_v48 }
  0x85   :  { %v155_v57 = vmul.f32 %v123_v49, %v123_v49  ;;  %v156_v58 = vmul.f32 %v124_v50, %v124_v50  ;;  %v157_v59 = vmul.f32 %v125_v51, %v125_v51  ;;  %v158_v60 = vmul.f32 %v126_v52, %v126_v52  ;;  %v116_v5 = vpop.permute.xlu1 %115  ;;  %v59_v13 = vpop.permute.xlu0 %58 }
  0x86   :  { %v175_v61 = vadd.f32 %v159_v53, %v143_v35  ;;  %v176_v62 = vadd.f32 %v160_v54, %v144_v36  ;;  %v552_v63 = vadd.f32 %v161_v55, %v145_v37  ;;  %v554_v0 = vadd.f32 %v162_v56, %v146_v38 }
  0x87   :  { %v171_v1 = vadd.f32 %v155_v57, %v139_v39  ;;  %v172_v2 = vadd.f32 %v156_v58, %v140_v40  ;;  %v556_v3 = vadd.f32 %v157_v59, %v141_v41  ;;  %v558_v4 = vadd.f32 %v158_v60, %v142_v42 }
  0x88   :  { %v191_v6 = vsub.f32 0.0, %v175_v61  ;;  %v192_v7 = vsub.f32 0.0, %v176_v62  ;;  %v131_v10 = vsub.f32 %v532_v25, %v116_v5  ;;  %v132_v12 = vsub.f32 %v534_v26, %v116_v5 }
  0x89   :  { %v187_v8 = vsub.f32 0.0, %v171_v1  ;;  %v188_v9 = vsub.f32 0.0, %v172_v2  ;;  %v133_v18 = vsub.f32 %v518_v15, %v116_v5  ;;  %v134_v24 = vsub.f32 %v520_v16, %v116_v5  ;;  %v121_v27 = vpop.permute.xlu1 %120  ;;  %v64_v48 = vpop.permute.xlu0 %63 }
  0x8a   :  { %v211_v19 = vmul.f32 1.442695, %v191_v6  ;;  %v213_v20 = vmul.f32 1.442695, %v192_v7  ;;  %v163_v28 = vmul.f32 %v131_v10, %v131_v10  ;;  %v164_v29 = vmul.f32 %v132_v12, %v132_v12 }
  0x8b   :  { %v203_v17 = vmul.f32 1.442695, %v187_v8  ;;  %v205_v23 = vmul.f32 1.442695, %v188_v9  ;;  %v74_v30 = vsub.f32 %v528_v21, %v59_v13  ;;  %v75_v31 = vsub.f32 %v530_v22, %v59_v13 }
  0x8c   :  { %v165_v32 = vmul.f32 %v133_v18, %v133_v18  ;;  %v166_v33 = vmul.f32 %v134_v24, %v134_v24  ;;  %v76_v34 = vsub.f32 %v508_v11, %v59_v13  ;;  %v77_v35 = vsub.f32 %v516_v14, %v59_v13 }
  0x8d   :  { %437 = vpow2.f32 %v203_v17  ;;  %v147_v36 = vmul.f32 %v74_v30, %v74_v30  ;;  %v148_v37 = vmul.f32 %v75_v31, %v75_v31  ;;  %v135_v38 = vsub.f32 %v532_v25, %v121_v27 }
  0x8e   :  { %439 = vpow2.f32 %v205_v23  ;;  %v149_v39 = vmul.f32 %v76_v34, %v76_v34  ;;  %v150_v40 = vmul.f32 %v77_v35, %v77_v35  ;;  %v136_v41 = vsub.f32 %v534_v26, %v121_v27 }
  0x8f   :  { %v179_v42 = vadd.f32 %v163_v28, %v147_v36  ;;  %v180_v43 = vadd.f32 %v164_v29, %v148_v37  ;;  %v137_v46 = vsub.f32 %v518_v15, %v121_v27  ;;  %v138_v47 = vsub.f32 %v520_v16, %v121_v27 }
  0x90   :  { %v570_v44 = vadd.f32 %v165_v32, %v149_v39  ;;  %v572_v45 = vadd.f32 %v166_v33, %v150_v40  ;;  %441 = vpow2.f32 %v211_v19  ;;  %v167_v25 = vmul.f32 %v135_v38, %v135_v38 }
  0x91   :  { %v195_v49 = vsub.f32 0.0, %v179_v42  ;;  %v196_v50 = vsub.f32 0.0, %v180_v43  ;;  %443 = vpow2.f32 %v213_v20  ;;  %v168_v51 = vmul.f32 %v136_v41, %v136_v41 }
  0x92   :  { %v78_v26 = vsub.f32 %v528_v21, %v64_v48  ;;  %v79_v54 = vsub.f32 %v530_v22, %v64_v48  ;;  %v169_v55 = vmul.f32 %v137_v46, %v137_v46  ;;  %v170_v56 = vmul.f32 %v138_v47, %v138_v47 }
  0x93   :  { %v219_v52 = vmul.f32 1.442695, %v195_v49  ;;  %v221_v53 = vmul.f32 1.442695, %v196_v50  ;;  %v80_v57 = vsub.f32 %v508_v11, %v64_v48  ;;  %v81_v15 = vsub.f32 %v516_v14, %v64_v48 }
  0x94   :  { %v151_v16 = vmul.f32 %v78_v26, %v78_v26  ;;  %v152_v58 = vmul.f32 %v79_v54, %v79_v54  ;;  %v189_v17 = vsub.f32 0.0, %v556_v3  ;;  %v190_v18 = vsub.f32 0.0, %v558_v4 }
  0x95   :  { %445 = vpow2.f32 %v219_v52  ;;  %v153_v59 = vmul.f32 %v80_v57, %v80_v57  ;;  %v154_v60 = vmul.f32 %v81_v15, %v81_v15  ;;  %v193_v19 = vsub.f32 0.0, %v552_v63 }
  0x96   :  { %447 = vpow2.f32 %v221_v53  ;;  %v183_v61 = vadd.f32 %v167_v25, %v151_v16  ;;  %v184_v62 = vadd.f32 %v168_v51, %v152_v58  ;;  %v207_v20 = vmul.f32 1.442695, %v189_v17 }
  0x97   :  { %v185_v1 = vadd.f32 %v169_v55, %v153_v59  ;;  %v186_v2 = vadd.f32 %v170_v56, %v154_v60  ;;  %v194_v23 = vsub.f32 0.0, %v554_v0  ;;  %v209_v24 = vmul.f32 1.442695, %v190_v18 }
  0x98   :  { %v199_v5 = vsub.f32 0.0, %v183_v61  ;;  %v200_v21 = vsub.f32 0.0, %v184_v62  ;;  %v215_v27 = vmul.f32 1.442695, %v193_v19  ;;  %v197_v28 = vsub.f32 0.0, %v570_v44 }
  0x99   :  { %v217_v29 = vmul.f32 1.442695, %v194_v23  ;;  %v198_v30 = vsub.f32 0.0, %v572_v45  ;;  %v201_v32 = vsub.f32 0.0, %v185_v1  ;;  %v202_v4 = vsub.f32 0.0, %v186_v2 }
  0x9a   :  { %v438_v6 = vpop.eup %437  ;;  %v227_v7 = vmul.f32 1.442695, %v199_v5  ;;  %v229_v8 = vmul.f32 1.442695, %v200_v21  ;;  %v223_v31 = vmul.f32 1.442695, %v197_v28 }
  0x9b   :  { %v440_v22 = vpop.eup %439  ;;  %235 = vxpose.xlu0.b32.start [1/4] (short) %v438_v6, 128  ;;  %v225_v3 = vmul.f32 1.442695, %v198_v30  ;;  %v231_v63 = vmul.f32 1.442695, %v201_v32  ;;  %v233_v33 = vmul.f32 1.442695, %v202_v4 }
  0x9c   :  { %267 = vxpose.xlu1.b32.start [1/4] (short) %v440_v22, 128  ;;  %449 = vpow2.f32 %v227_v7 }
  0x9d   :  { %v442_v11 = vpop.eup %441  ;;  %451 = vpow2.f32 %v229_v8 }
  0x9e   :  { %v444_v14 = vpop.eup %443  ;;  %453 = vpow2.f32 %v207_v20 }
  0x9f   :  { %236 = vxpose.xlu0.b32.cont [2/4] (short) %v442_v11, 128  ;;  %455 = vpow2.f32 %v209_v24 }
  0xa0   :  { %268 = vxpose.xlu1.b32.cont [2/4] (short) %v444_v14, 128  ;;  %457 = vpow2.f32 %v215_v27 }
  0xa1   :  { %459 = vpow2.f32 %v217_v29 }
  0xa2   :  { %v446_v9 = vpop.eup %445  ;;  %461 = vpow2.f32 %v223_v31 }
  0xa3   :  { %v448_v10 = vpop.eup %447  ;;  %237 = vxpose.xlu0.b32.cont [3/4] (short) %v446_v9, 128  ;;  %463 = vpow2.f32 %v225_v3 }
  0xa4   :  { %269 = vxpose.xlu1.b32.cont [3/4] (short) %v448_v10, 128  ;;  %465 = vpow2.f32 %v231_v63 }
  0xa5   :  { %467 = vpow2.f32 %v233_v33 }
  0xa9   :  { %v450_v12 = vpop.eup %449 }
  0xaa   :  { %v452_v13 = vpop.eup %451  ;;  %238 = vxpose.xlu0.b32.end [4/4] (short) %v450_v12, 128 }
  0xab   :  { %270 = vxpose.xlu1.b32.end [4/4] (short) %v452_v13, 128  ;;  %v454_v0 = vpop.eup %453 }
  0xac   :  { %v456_v34 = vpop.eup %455 }
  0xad   :  { %v458_v35 = vpop.eup %457 }
  0xae   :  { %v460_v36 = vpop.eup %459 }
  0xaf   :  { %v462_v37 = vpop.eup %461 }
  0xb0   :  { %v464_v38 = vpop.eup %463 }
  0xb1   :  { %v466_v39 = vpop.eup %465 }
  0xb2   :  { %v468_v40 = vpop.eup %467 }
  0xdb   :  { %299 = vxpose.xlu0.b32.start [1/4] (short) %v454_v0, 128 }
  0xdc   :  { %331 = vxpose.xlu1.b32.start [1/4] (short) %v456_v34, 128 }
  0xdf   :  { %300 = vxpose.xlu0.b32.cont [2/4] (short) %v458_v35, 128 }
  0xe0   :  { %332 = vxpose.xlu1.b32.cont [2/4] (short) %v460_v36, 128 }
  0xe3   :  { %301 = vxpose.xlu0.b32.cont [3/4] (short) %v462_v37, 128 }
  0xe4   :  { %333 = vxpose.xlu1.b32.cont [3/4] (short) %v464_v38, 128 }
  0xe7   :  { %302 = vxpose.xlu0.b32.end [4/4] (short) %v466_v39, 128 }
  0xe8   :  { %334 = vxpose.xlu1.b32.end [4/4] (short) %v468_v40, 128 }
 0x11a   :  { %v251_v41 = vpop.trf.xlu0 }
 0x11b   :  { %v283_v42 = vpop.trf.xlu1  ;;  %364 = vst.msk [vmem:[%s845_s3] sm:$0xff] %vm363_vm0, %v251_v41 }
 0x11c   :  { %380 = vst.msk [vmem:[%s845_s3 + $0x80] sm:$0xff] %vm363_vm0, %v283_v42 }
 0x11e   :  { %v252_v43 = vpop.trf.xlu0 }
 0x11f   :  { %v284_v44 = vpop.trf.xlu1  ;;  %365 = vst.msk [vmem:[%s845_s3 + $0x8] sm:$0xff] %vm363_vm0, %v252_v43 }
 0x120   :  { %381 = vst.msk [vmem:[%s845_s3 + $0x88] sm:$0xff] %vm363_vm0, %v284_v44 }
 0x122   :  { %v253_v45 = vpop.trf.xlu0 }
 0x123   :  { %v285_v46 = vpop.trf.xlu1  ;;  %366 = vst.msk [vmem:[%s845_s3 + $0x10] sm:$0xff] %vm363_vm0, %v253_v45 }
 0x124   :  { %382 = vst.msk [vmem:[%s845_s3 + $0x90] sm:$0xff] %vm363_vm0, %v285_v46 }
 0x126   :  { %v254_v47 = vpop.trf.xlu0 }
 0x127   :  { %v286_v48 = vpop.trf.xlu1  ;;  %367 = vst.msk [vmem:[%s845_s3 + $0x18] sm:$0xff] %vm363_vm0, %v254_v47 }
 0x128   :  { %383 = vst.msk [vmem:[%s845_s3 + $0x98] sm:$0xff] %vm363_vm0, %v286_v48 }
 0x12a   :  { %v255_v49 = vpop.trf.xlu0 }
 0x12b   :  { %v287_v50 = vpop.trf.xlu1  ;;  %368 = vst.msk [vmem:[%s845_s3 + $0x20] sm:$0xff] %vm363_vm0, %v255_v49 }
 0x12c   :  { %384 = vst.msk [vmem:[%s845_s3 + $0xa0] sm:$0xff] %vm363_vm0, %v287_v50 }
 0x12e   :  { %v256_v25 = vpop.trf.xlu0 }
 0x12f   :  { %v288_v51 = vpop.trf.xlu1  ;;  %369 = vst.msk [vmem:[%s845_s3 + $0x28] sm:$0xff] %vm363_vm0, %v256_v25 }
 0x130   :  { %385 = vst.msk [vmem:[%s845_s3 + $0xa8] sm:$0xff] %vm363_vm0, %v288_v51 }
 0x132   :  { %v257_v52 = vpop.trf.xlu0 }
 0x133   :  { %v289_v53 = vpop.trf.xlu1  ;;  %370 = vst.msk [vmem:[%s845_s3 + $0x30] sm:$0xff] %vm363_vm0, %v257_v52 }
 0x134   :  { %386 = vst.msk [vmem:[%s845_s3 + $0xb0] sm:$0xff] %vm363_vm0, %v289_v53 }
 0x136   :  { %v258_v26 = vpop.trf.xlu0 }
 0x137   :  { %v290_v54 = vpop.trf.xlu1  ;;  %371 = vst.msk [vmem:[%s845_s3 + $0x38] sm:$0xff] %vm363_vm0, %v258_v26 }
 0x138   :  { %387 = vst.msk [vmem:[%s845_s3 + $0xb8] sm:$0xff] %vm363_vm0, %v290_v54 }
 0x13a   :  { %v259_v55 = vpop.trf.xlu0 }
 0x13b   :  { %v291_v56 = vpop.trf.xlu1  ;;  %372 = vst.msk [vmem:[%s845_s3 + $0x40] sm:$0xff] %vm363_vm0, %v259_v55 }
 0x13c   :  { %388 = vst.msk [vmem:[%s845_s3 + $0xc0] sm:$0xff] %vm363_vm0, %v291_v56 }
 0x13e   :  { %v260_v57 = vpop.trf.xlu0 }
 0x13f   :  { %v292_v15 = vpop.trf.xlu1  ;;  %373 = vst.msk [vmem:[%s845_s3 + $0x48] sm:$0xff] %vm363_vm0, %v260_v57 }
 0x140   :  { %389 = vst.msk [vmem:[%s845_s3 + $0xc8] sm:$0xff] %vm363_vm0, %v292_v15 }
 0x142   :  { %v261_v16 = vpop.trf.xlu0 }
 0x143   :  { %v293_v58 = vpop.trf.xlu1  ;;  %374 = vst.msk [vmem:[%s845_s3 + $0x50] sm:$0xff] %vm363_vm0, %v261_v16 }
 0x144   :  { %390 = vst.msk [vmem:[%s845_s3 + $0xd0] sm:$0xff] %vm363_vm0, %v293_v58 }
 0x146   :  { %v262_v59 = vpop.trf.xlu0 }
 0x147   :  { %v294_v60 = vpop.trf.xlu1  ;;  %375 = vst.msk [vmem:[%s845_s3 + $0x58] sm:$0xff] %vm363_vm0, %v262_v59 }
 0x148   :  { %391 = vst.msk [vmem:[%s845_s3 + $0xd8] sm:$0xff] %vm363_vm0, %v294_v60 }
 0x14a   :  { %v263_v61 = vpop.trf.xlu0 }
 0x14b   :  { %v295_v62 = vpop.trf.xlu1  ;;  %376 = vst.msk [vmem:[%s845_s3 + $0x60] sm:$0xff] %vm363_vm0, %v263_v61 }
 0x14c   :  { %392 = vst.msk [vmem:[%s845_s3 + $0xe0] sm:$0xff] %vm363_vm0, %v295_v62 }
 0x14e   :  { %v264_v1 = vpop.trf.xlu0 }
 0x14f   :  { %v296_v2 = vpop.trf.xlu1  ;;  %377 = vst.msk [vmem:[%s845_s3 + $0x68] sm:$0xff] %vm363_vm0, %v264_v1 }
 0x150   :  { %393 = vst.msk [vmem:[%s845_s3 + $0xe8] sm:$0xff] %vm363_vm0, %v296_v2 }
 0x152   :  { %v265_v5 = vpop.trf.xlu0 }
 0x153   :  { %v297_v21 = vpop.trf.xlu1  ;;  %378 = vst.msk [vmem:[%s845_s3 + $0x70] sm:$0xff] %vm363_vm0, %v265_v5 }
 0x154   :  { %394 = vst.msk [vmem:[%s845_s3 + $0xf0] sm:$0xff] %vm363_vm0, %v297_v21 }
 0x156   :  { %v266_v6 = vpop.trf.xlu0 }
 0x157   :  { %v298_v22 = vpop.trf.xlu1  ;;  %379 = vst.msk [vmem:[%s845_s3 + $0x78] sm:$0xff] %vm363_vm0, %v266_v6 }
 0x158   :  { %395 = vst.msk [vmem:[%s845_s3 + $0xf8] sm:$0xff] %vm363_vm0, %v298_v22 }
 0x15a   :  { %v315_v7 = vpop.trf.xlu0 }
 0x15b   :  { %v347_v8 = vpop.trf.xlu1  ;;  %396 = vst.msk [vmem:[%s845_s3 + $0x100] sm:$0xff] %vm363_vm0, %v315_v7 }
 0x15c   :  { %412 = vst.msk [vmem:[%s845_s3 + $0x180] sm:$0xff] %vm363_vm0, %v347_v8 }
 0x15e   :  { %v316_v11 = vpop.trf.xlu0 }
 0x15f   :  { %v348_v14 = vpop.trf.xlu1  ;;  %397 = vst.msk [vmem:[%s845_s3 + $0x108] sm:$0xff] %vm363_vm0, %v316_v11 }
 0x160   :  { %413 = vst.msk [vmem:[%s845_s3 + $0x188] sm:$0xff] %vm363_vm0, %v348_v14 }
 0x162   :  { %v317_v9 = vpop.trf.xlu0 }
 0x163   :  { %v349_v10 = vpop.trf.xlu1  ;;  %398 = vst.msk [vmem:[%s845_s3 + $0x110] sm:$0xff] %vm363_vm0, %v317_v9 }
 0x164   :  { %414 = vst.msk [vmem:[%s845_s3 + $0x190] sm:$0xff] %vm363_vm0, %v349_v10 }
 0x166   :  { %v318_v12 = vpop.trf.xlu0 }
 0x167   :  { %v350_v13 = vpop.trf.xlu1  ;;  %399 = vst.msk [vmem:[%s845_s3 + $0x118] sm:$0xff] %vm363_vm0, %v318_v12 }
 0x168   :  { %415 = vst.msk [vmem:[%s845_s3 + $0x198] sm:$0xff] %vm363_vm0, %v350_v13 }
 0x16a   :  { %v319_v17 = vpop.trf.xlu0 }
 0x16b   :  { %v351_v18 = vpop.trf.xlu1  ;;  %400 = vst.msk [vmem:[%s845_s3 + $0x120] sm:$0xff] %vm363_vm0, %v319_v17 }
 0x16c   :  { %416 = vst.msk [vmem:[%s845_s3 + $0x1a0] sm:$0xff] %vm363_vm0, %v351_v18 }
 0x16e   :  { %v320_v19 = vpop.trf.xlu0 }
 0x16f   :  { %v352_v20 = vpop.trf.xlu1  ;;  %401 = vst.msk [vmem:[%s845_s3 + $0x128] sm:$0xff] %vm363_vm0, %v320_v19 }
 0x170   :  { %417 = vst.msk [vmem:[%s845_s3 + $0x1a8] sm:$0xff] %vm363_vm0, %v352_v20 }
 0x172   :  { %v321_v23 = vpop.trf.xlu0 }
 0x173   :  { %v353_v24 = vpop.trf.xlu1  ;;  %402 = vst.msk [vmem:[%s845_s3 + $0x130] sm:$0xff] %vm363_vm0, %v321_v23 }
 0x174   :  { %418 = vst.msk [vmem:[%s845_s3 + $0x1b0] sm:$0xff] %vm363_vm0, %v353_v24 }
 0x176   :  { %v322_v27 = vpop.trf.xlu0 }
 0x177   :  { %v354_v28 = vpop.trf.xlu1  ;;  %403 = vst.msk [vmem:[%s845_s3 + $0x138] sm:$0xff] %vm363_vm0, %v322_v27 }
 0x178   :  { %419 = vst.msk [vmem:[%s845_s3 + $0x1b8] sm:$0xff] %vm363_vm0, %v354_v28 }
 0x17a   :  { %v323_v29 = vpop.trf.xlu0 }
 0x17b   :  { %v355_v30 = vpop.trf.xlu1  ;;  %404 = vst.msk [vmem:[%s845_s3 + $0x140] sm:$0xff] %vm363_vm0, %v323_v29 }
 0x17c   :  { %420 = vst.msk [vmem:[%s845_s3 + $0x1c0] sm:$0xff] %vm363_vm0, %v355_v30 }
 0x17e   :  { %v324_v31 = vpop.trf.xlu0 }
 0x17f   :  { %v356_v32 = vpop.trf.xlu1  ;;  %405 = vst.msk [vmem:[%s845_s3 + $0x148] sm:$0xff] %vm363_vm0, %v324_v31 }
 0x180   :  { %421 = vst.msk [vmem:[%s845_s3 + $0x1c8] sm:$0xff] %vm363_vm0, %v356_v32 }
 0x182   :  { %v325_v3 = vpop.trf.xlu0 }
 0x183   :  { %v357_v4 = vpop.trf.xlu1  ;;  %406 = vst.msk [vmem:[%s845_s3 + $0x150] sm:$0xff] %vm363_vm0, %v325_v3 }
 0x184   :  { %422 = vst.msk [vmem:[%s845_s3 + $0x1d0] sm:$0xff] %vm363_vm0, %v357_v4 }
 0x186   :  { %v326_v63 = vpop.trf.xlu0 }
 0x187   :  { %v358_v33 = vpop.trf.xlu1  ;;  %407 = vst.msk [vmem:[%s845_s3 + $0x158] sm:$0xff] %vm363_vm0, %v326_v63 }
 0x188   :  { %423 = vst.msk [vmem:[%s845_s3 + $0x1d8] sm:$0xff] %vm363_vm0, %v358_v33 }
 0x18a   :  { %v327_v0 = vpop.trf.xlu0 }
 0x18b   :  { %v359_v34 = vpop.trf.xlu1  ;;  %408 = vst.msk [vmem:[%s845_s3 + $0x160] sm:$0xff] %vm363_vm0, %v327_v0 }
 0x18c   :  { %424 = vst.msk [vmem:[%s845_s3 + $0x1e0] sm:$0xff] %vm363_vm0, %v359_v34 }
 0x18e   :  { %v328_v35 = vpop.trf.xlu0 }
 0x18f   :  { %v360_v36 = vpop.trf.xlu1  ;;  %409 = vst.msk [vmem:[%s845_s3 + $0x168] sm:$0xff] %vm363_vm0, %v328_v35 }
 0x190   :  { %425 = vst.msk [vmem:[%s845_s3 + $0x1e8] sm:$0xff] %vm363_vm0, %v360_v36 }
 0x192   :  { %v329_v37 = vpop.trf.xlu0 }
 0x193   :  { %v361_v38 = vpop.trf.xlu1  ;;  %410 = vst.msk [vmem:[%s845_s3 + $0x170] sm:$0xff] %vm363_vm0, %v329_v37 }
 0x194   :  { %426 = vst.msk [vmem:[%s845_s3 + $0x1f0] sm:$0xff] %vm363_vm0, %v361_v38 }
 0x196   :  { %v330_v39 = vpop.trf.xlu0 }
 0x197   :  { %v362_v40 = vpop.trf.xlu1  ;;  %411 = vst.msk [vmem:[%s845_s3 + $0x178] sm:$0xff] %vm363_vm0, %v330_v39 }
 0x198   :  { %427 = vst.msk [vmem:[%s845_s3 + $0x1f8] sm:$0xff] %vm363_vm0, %v362_v40 }

</bundles_post_ra>
